<compile_context>
chip_gen: v7x
topology: tpu7x:2x2x1
jax: 0.10.0
libtpu: 0.0.40
codegen_flags: <defaults>
</compile_context>

<pallas_src>
from functools import reduce

import jax
import jax.numpy as jnp
from jax.experimental import pallas as pl
from jax.experimental.pallas import tpu as pltpu


def _round_up(x, m):
    return ((x + m - 1) // m) * m


def _cdiv(a, b):
    return (a + b - 1) // b


def _pick_tile(dim, candidates):
    for c in candidates:
        if dim % c == 0:
            return c
    return dim


def _default_vmem_budget():
    """~60% of per-core VMEM (v7x-safe), falling back to 40 MiB."""
    try:
        cap = int(pltpu.get_tpu_info().vmem_capacity_bytes)
        return max(32 << 20, min(int(cap * 0.6), 80 << 20))
    except Exception:
        return 40 << 20


# ---------------------------------------------------------------------------
# Path A kernel: weight fully VMEM-resident.  grid = (Mp // tm,).
# One MXU contraction per M block, bias fused into the epilogue store.
# No K reduction axis, no accumulator scratch, no K/H padding.
# ---------------------------------------------------------------------------
def _embed_resident_kernel(p_ref, w_ref, b_ref, o_ref):
    acc = jnp.dot(p_ref[...], w_ref[...], preferred_element_type=jnp.float32)
    o_ref[...] = (acc + b_ref[...]).astype(o_ref.dtype)


# ---------------------------------------------------------------------------
# Path B kernel (fallback, weight too large for VMEM): 3-D tiled matmul with
# K reduction axis last ("arbitrary"), f32 VMEM accumulator, init on k==0,
# bias-add + store on the last K step.
# ---------------------------------------------------------------------------
def _embed_tiled_kernel(p_ref, w_ref, b_ref, o_ref, acc_ref):
    k = pl.program_id(2)

    @pl.when(k == 0)
    def _():
        acc_ref[...] = jnp.zeros_like(acc_ref)

    acc_ref[...] += jnp.dot(p_ref[...], w_ref[...],
                            preferred_element_type=jnp.float32)

    @pl.when(k == pl.num_programs(2) - 1)
    def _():
        o_ref[...] = (acc_ref[...] + b_ref[...]).astype(o_ref.dtype)


def pallas_embedding(patches, weight, bias, *,
                     out_dtype=jnp.float32,
                     compute_dtype=jnp.bfloat16,
                     vmem_budget_bytes=None,
                     force_tiled=False):
    """out = patches @ weight + bias  with shapes (M, K) @ (K, H) -> (M, H)."""
    M, K = patches.shape
    Kw, H = weight.shape
    assert K == Kw
    if vmem_budget_bytes is None:
        vmem_budget_bytes = _default_vmem_budget()

    cbytes = jnp.dtype(compute_dtype).itemsize
    obytes = jnp.dtype(out_dtype).itemsize
    vmem_limit = min(_round_up(int(vmem_budget_bytes * 1.25), 1 << 20),
                     100 << 20)

    p = patches.astype(compute_dtype)            # no-op if already bf16
    w = weight.astype(compute_dtype)
    b2 = bias.astype(jnp.float32).reshape(1, H)

    # Count the weight double-buffered (conservative) even though its block
    # index never changes across the grid.
    weight_vmem = 2 * K * H * cbytes
    use_resident = (not force_tiled) and weight_vmem <= vmem_budget_bytes // 2

    if use_resident:
        # ------------- Path A: weight resident, grid over M only -----------
        def plan_bytes(tm):
            return (2 * tm * K * cbytes        # double-buffered patch slab
                    + weight_vmem              # resident weight
                    + 2 * tm * H * obytes      # double-buffered output
                    + 2 * H * 4)               # bias

        tm_target = 1024 if vmem_budget_bytes >= (64 << 20) else 512
        if M >= 2 * 128:
            tm = tm_target
            # Keep >= 2 M blocks so megacore parts (v7x 2 TCs) can split work.
            while tm > 128 and _cdiv(M, tm) < 2:
                tm //= 2
        else:
            tm = _round_up(max(M, 8), 8)
        while tm > 8 and plan_bytes(tm) > vmem_budget_bytes:
            tm = max(8, _round_up(tm // 2, 8))
        Mp = _round_up(M, tm)
        if Mp != M:
            p = jnp.pad(p, ((0, Mp - M), (0, 0)))

        cost = pl.CostEstimate(
            flops=2 * Mp * K * H,
            transcendentals=0,
            bytes_accessed=(Mp * K + K * H) * cbytes + Mp * H * obytes + H * 4)

        out = pl.pallas_call(
            _embed_resident_kernel,
            out_shape=jax.ShapeDtypeStruct((Mp, H), out_dtype),
            grid_spec=pltpu.PrefetchScalarGridSpec(
                num_scalar_prefetch=0,
                grid=(Mp // tm,),
                in_specs=[
                    pl.BlockSpec((tm, K), lambda i: (i, 0)),   # patch rows
                    pl.BlockSpec((K, H), lambda i: (0, 0)),    # resident weight
                    pl.BlockSpec((1, H), lambda i: (0, 0)),    # bias
                ],
                out_specs=pl.BlockSpec((tm, H), lambda i: (i, 0)),
            ),
            compiler_params=pltpu.CompilerParams(
                dimension_semantics=("parallel",),
                vmem_limit_bytes=vmem_limit),
            cost_estimate=cost,
        )(p, w, b2)
        return out if Mp == M else out[:M]

    # --------------- Path B: stream K/H tiles of the weight ----------------
    Hp = _round_up(H, 128)
    tn = _pick_tile(Hp, (512, 256, 128))
    Kp = _round_up(K, 128)
    tk = _pick_tile(Kp, (1024, 896, 768, 640, 512, 384, 256, 128))
    if tk < 256 and Kp >= 1024:        # don't let tk collapse to 128 for big K
        tk = 512
        Kp = _round_up(K, tk)

    def plan_bytes(tm, tk, tn):
        return (2 * (tm * tk + tk * tn + tn) * cbytes
                + tm * tn * 4 + 2 * tm * tn * obytes)

    if M >= 2 * 128:
        tm = 512
        while tm > 128 and _cdiv(M, tm) < 2:
            tm //= 2
    else:
        tm = _round_up(max(M, 8), 8)
    while plan_bytes(tm, tk, tn) > vmem_budget_bytes and tk > 256:
        tk //= 2
        Kp = _round_up(K, tk)
    while plan_bytes(tm, tk, tn) > vmem_budget_bytes and tm > 8:
        tm = max(8, _round_up(tm // 2, 8))
    Mp = _round_up(M, tm)

    p = jnp.pad(p, ((0, Mp - M), (0, Kp - K)))
    wpad = jnp.pad(w, ((0, Kp - K), (0, Hp - H)))
    bpad = jnp.pad(b2, ((0, 0), (0, Hp - H)))

    cost = pl.CostEstimate(
        flops=2 * Mp * Kp * Hp,
        transcendentals=0,
        # Weight is re-read once per M block with this tiling.
        bytes_accessed=(Mp * Kp + (Mp // tm) * Kp * Hp) * cbytes
        + Mp * Hp * obytes + Hp * 4)

    out = pl.pallas_call(
        _embed_tiled_kernel,
        out_shape=jax.ShapeDtypeStruct((Mp, Hp), out_dtype),
        grid_spec=pltpu.PrefetchScalarGridSpec(
            num_scalar_prefetch=0,
            grid=(Mp // tm, Hp // tn, Kp // tk),
            in_specs=[
                pl.BlockSpec((tm, tk), lambda i, j, k: (i, k)),
                pl.BlockSpec((tk, tn), lambda i, j, k: (k, j)),
                pl.BlockSpec((1, tn), lambda i, j, k: (0, j)),
            ],
            out_specs=pl.BlockSpec((tm, tn), lambda i, j, k: (i, j)),
            scratch_shapes=[pltpu.VMEM((tm, tn), jnp.float32)],
        ),
        compiler_params=pltpu.CompilerParams(
            dimension_semantics=("parallel", "parallel", "arbitrary"),
            vmem_limit_bytes=vmem_limit),
        cost_estimate=cost,
    )(p, wpad, bpad)
    return out[:M, :H]


# ---------------------------------------------------------------------------
# nn.Unfold + permute(0, 2, 1) equivalent, built directly channel-last.
# Per-token column order matches PyTorch: C slowest, then kh, then kw.
# Token order: (frame, f_h, f_w) — same as Unfold's L axis.
# ---------------------------------------------------------------------------
def extract_patches(x, kernel_size, stride, padding, *, dtype=None):
    kh, kw = kernel_size
    sh, sw = stride
    ph, pw = padding
    N, C, Hdim, Wdim = x.shape
    if dtype is not None:
        x = x.astype(dtype)                         # cast once, at input size
    xh = jnp.transpose(x, (0, 2, 3, 1))             # NHWC: one layout pass
    xp = jnp.pad(xh, ((0, 0), (ph, ph), (pw, pw), (0, 0)))
    f_h = (Hdim + 2 * ph - kh) // sh + 1
    f_w = (Wdim + 2 * pw - kw) // sw + 1
    cols = [xp[:, i:i + sh * f_h:sh, j:j + sw * f_w:sw, :]   # (N, fh, fw, C)
            for i in range(kh) for j in range(kw)]
    col = jnp.stack(cols, axis=-1)                  # (N, fh, fw, C, kh*kw)
    patches = col.reshape(N * f_h * f_w, C * kh * kw)
    return patches, f_h, f_w


# ---------------------------------------------------------------------------
# SoftSplit module (JAX / Pallas)
# ---------------------------------------------------------------------------
class SoftSplit:
    def __init__(self, channel, hidden, kernel_size, stride, padding, *, key,
                 out_dtype=jnp.float32, compute_dtype=jnp.bfloat16):
        self.channel = channel
        self.hidden = hidden
        self.kernel_size = kernel_size
        self.stride = stride
        self.padding = padding
        self.out_dtype = out_dtype
        self.compute_dtype = compute_dtype
        c_in = reduce(lambda a, b: a * b, kernel_size) * channel
        self.c_in = c_in
        k_w, k_b = jax.random.split(key)
        bound = 1.0 / (c_in ** 0.5)
        # nn.Linear stores weight (hidden, c_in); keep transposed (c_in, hidden)
        self.weight = jax.random.uniform(
            k_w, (c_in, hidden), jnp.float32, -bound, bound)
        self.bias = jax.random.uniform(
            k_b, (hidden,), jnp.float32, -bound, bound)

    def __call__(self, x, b, output_size):
        # x: (B*T, C, H, W) NCHW, output_size = (H, W)
        f_h = (output_size[0] + 2 * self.padding[0]
               - (self.kernel_size[0] - 1) - 1) // self.stride[0] + 1
        f_w = (output_size[1] + 2 * self.padding[1]
               - (self.kernel_size[1] - 1) - 1) // self.stride[1] + 1

        patches, fh, fw = extract_patches(
            x, self.kernel_size, self.stride, self.padding,
            dtype=self.compute_dtype)                       # (N*L, c_in) bf16
        assert (fh, fw) == (f_h, f_w)

        emb = pallas_embedding(patches, self.weight, self.bias,
                               out_dtype=self.out_dtype,
                               compute_dtype=self.compute_dtype)
        # Same as torch: ((b*t)*L, hidden) viewed as (b, t, f_h, f_w, hidden)
        return emb.reshape(b, -1, f_h, f_w, self.hidden)


# ---------------------------------------------------------------------------
# Reference (pure jnp, f32) for verification
# ---------------------------------------------------------------------------
def softsplit_ref(module, x, b, output_size):
    patches, f_h, f_w = extract_patches(
        x, module.kernel_size, module.stride, module.padding)
    feat = patches @ module.weight + module.bias
    return feat.reshape(b, -1, f_h, f_w, module.hidden)


if __name__ == "__main__":
    key = jax.random.PRNGKey(0)
    k_x, k_p = jax.random.split(key)

    # small but representative: b=2 videos, t=2 frames, C=4, 16x16 spatial
    b, t = 2, 2
    channel, hidden = 4, 32
    kernel_size, stride, padding = (3, 3), (2, 2), (1, 1)
    H = W = 16

    x = jax.random.normal(k_x, (b * t, channel, H, W), jnp.float32)
    module = SoftSplit(channel, hidden, kernel_size, stride, padding, key=k_p)

    fwd = jax.jit(lambda xx: module(xx, b, (H, W)))
    out = jax.block_until_ready(fwd(x))
    ref = softsplit_ref(module, x, b, (H, W))

    f_h = (H + 2 * padding[0] - (kernel_size[0] - 1) - 1) // stride[0] + 1
    f_w = (W + 2 * padding[1] - (kernel_size[1] - 1) - 1) // stride[1] + 1
    assert out.shape == (b, t, f_h, f_w, hidden), out.shape
    assert out.shape == ref.shape, (out.shape, ref.shape)
    # bf16 MXU inputs with f32 accumulation vs f32 reference -> relaxed tol.
    err = float(jnp.max(jnp.abs(out - ref)))
    assert jnp.allclose(out, ref, atol=2e-2, rtol=2e-2), err

    # Also exercise the K-tiled fallback path (Path B, weight streamed).
    patches_f32, _, _ = extract_patches(x, kernel_size, stride, padding)
    ref_flat = patches_f32 @ module.weight + module.bias
    out_b = jax.block_until_ready(
        pallas_embedding(patches_f32, module.weight, module.bias,
                         force_tiled=True))
    err_b = float(jnp.max(jnp.abs(out_b - ref_flat)))
    assert jnp.allclose(out_b, ref_flat, atol=2e-2, rtol=2e-2), err_b

    print("KERNEL_OK")
</pallas_src>

<mosaic_0001>
module attributes {stable_mosaic.version = 11 : i64} {
  func.func @_embed_resident_kernel(%arg0: i32, %arg1: memref<128x36xbf16, #tpu.memory_space<vmem>>, %arg2: memref<36x32xbf16, #tpu.memory_space<vmem>>, %arg3: memref<1x32xf32, #tpu.memory_space<vmem>>, %arg4: memref<128x32xf32, #tpu.memory_space<vmem>>) attributes {dimension_semantics = [#tpu.dimension_semantics<parallel>], iteration_bounds = array<i64: 2>, scalar_prefetch = 0 : i64, scratch_operands = 0 : i64, tpu.core_type = #tpu.core_type<tc>, window_params = [{transform_indices = @transform_0, window_bounds = array<i64: 128, 36>}, {pipeline_mode = #tpu.pipeline_mode<synchronous>, transform_indices = @transform_1, window_bounds = array<i64: 36, 32>}, {pipeline_mode = #tpu.pipeline_mode<synchronous>, transform_indices = @transform_2, window_bounds = array<i64: 1, 32>}, {transform_indices = @transform_3, window_bounds = array<i64: 128, 32>}]} {
    %c0 = arith.constant 0 : index
    %c0_0 = arith.constant 0 : index
    %0 = vector.load %arg1[%c0, %c0_0] : memref<128x36xbf16, #tpu.memory_space<vmem>>, vector<128x36xbf16>
    %c0_1 = arith.constant 0 : index
    %c0_2 = arith.constant 0 : index
    %1 = vector.load %arg2[%c0_1, %c0_2] : memref<36x32xbf16, #tpu.memory_space<vmem>>, vector<36x32xbf16>
    %cst = arith.constant dense<0.000000e+00> : vector<128x32xf32>
    %2 = tpu.matmul %0, %1, %cst {dimension_numbers = #tpu.dot_dimension_numbers<[1], [0], [0], [1], [0, 0, 1, 1], [], []>} : vector<128x36xbf16>, vector<36x32xbf16>, vector<128x32xf32> -> vector<128x32xf32>
    %c0_3 = arith.constant 0 : index
    %c0_4 = arith.constant 0 : index
    %3 = vector.load %arg3[%c0_3, %c0_4] : memref<1x32xf32, #tpu.memory_space<vmem>>, vector<1x32xf32>
    %4 = vector.broadcast %3 : vector<1x32xf32> to vector<128x32xf32>
    %5 = arith.addf %2, %4 : vector<128x32xf32>
    %c0_5 = arith.constant 0 : index
    %c0_6 = arith.constant 0 : index
    %6 = vector.load %arg4[%c0_5, %c0_6] : memref<128x32xf32, #tpu.memory_space<vmem>>, vector<128x32xf32>
    tpu.vector_store %arg4[%c0_5, %c0_6], %5 {strides = array<i32>} : memref<128x32xf32, #tpu.memory_space<vmem>>, vector<128x32xf32>,
    return
  }
  func.func @transform_0(%arg0: i32) -> (i32, i32) {
    %c0_i32 = arith.constant 0 : i32
    %c0_i32_0 = arith.constant 0 : i32
    return %arg0, %c0_i32 : i32, i32
  }
  func.func @transform_1(%arg0: i32) -> (i32, i32) {
    %c0_i32 = arith.constant 0 : i32
    %c0_i32_0 = arith.constant 0 : i32
    %c0_i32_1 = arith.constant 0 : i32
    return %c0_i32, %c0_i32_0 : i32, i32
  }
  func.func @transform_2(%arg0: i32) -> (i32, i32) {
    %c0_i32 = arith.constant 0 : i32
    %c0_i32_0 = arith.constant 0 : i32
    %c0_i32_1 = arith.constant 0 : i32
    return %c0_i32, %c0_i32_0 : i32, i32
  }
  func.func @transform_3(%arg0: i32) -> (i32, i32) {
    %c0_i32 = arith.constant 0 : i32
    %c0_i32_0 = arith.constant 0 : i32
    return %arg0, %c0_i32 : i32, i32
  }
}

</mosaic_0001>

<bundles_post_ra>
// kernel: _lambda_.1
= control target key start
LH: loop header
LB: loop body
LE: loop exit
PB: predicated region body
PF: predicated region fallthrough
CT: control target
= control target key end

     0   :  { %8 = vsyncpa [#allocation3], 0  ;;  %s849_s0 = inlined_call_operand.vmem [shape: bf16[256,36], index: 0, kind: input, shape index: {}]   ;;  %s850_s1 = inlined_call_operand.vmem [shape: bf16[36,32], index: 1, kind: input, shape index: {}]   ;;  %s851_s2 = inlined_call_operand.vmem [shape: f32[1,32], index: 2, kind: input, shape index: {}]   ;;  %s852_s3 = inlined_call_operand.hbm [shape: f32[256,32], index: 3, kind: output, shape index: {}]  }
   0x1   :  { %10 = vsyncpa [#allocation3 + $0x1], 0  ;;  %s688_s12 = smov 0   ;;  %s690_s13 = smov 0  }
   0x2   :  { %s692_s14 = smov 0   ;;  %s694_s15 = smov 0  }
   0x3 LB: > { %s709_s16 = sadd.s32 4294967295, %s663_s15   ;;  %s475_s17 = sadd.s32 4294967294, %s663_s15   ;;  %s663_s15 = sphi %s694_s15, %s858_s15   ;;  %s659_s14 = sphi %s692_s14, %s857_s14   ;;  %s655_s13 = sphi %s690_s13, %s856_s13   ;;  %s651_s12 = sphi %s688_s12, %s855_s12  }
   0x4   : > { %s713_s18 = sadd.s32 1, %s663_s15   ;;  %s91_s19 = sadd.s32 1, %s659_s14 }
   0x5   : > { %s88_s20 = ssub.s32 %s663_s15, %s713_s18  ;;  %p101_p0 = scmp.ne.s32.totalorder %s659_s14, %s655_s13 }
   0x6   : > { %p89_p1 = scmp.eq.s32.totalorder %s88_s20, 0  ;;  %p102_p2 = scmp.eq.s32.totalorder %s709_s16, 1 }
   0x7   : > { %p107_p3 = scmp.ne.s32.totalorder %s655_s13, %s651_s12  ;;  %p108_p4 = scmp.eq.s32.totalorder %s475_s17, 1 }
   0x8   : > { %s724_s21 = scalar_select %p89_p1, %s659_s14, %s91_s19  }
   0x9   : > { %p726_p5 = por %p102_p2, %p101_p0  ;;  %p730_p6 = por %p108_p4, %p107_p3 }
   0xa   : > { %p478_p7 = scmp.ge.s32.totalorder %s663_s15, 1  ;;  %p141_p8 = scmp.lt.s32.totalorder %s663_s15, 3 }
   0xc   : > { %p142_p9 = pnand %p478_p7, %p141_p8 }
   0xd   : > { %v590_v0 = vld [vmem:[%s850_s1] sm:$0xff] (!%p142_p9)   ;;  %v591_v1 = vld [vmem:[%s850_s1 + $0x8] sm:$0xff] (!%p142_p9)   ;;  %s480_s28 = sshll.u32 (!%p142_p9), %s709_s16, 4  ;;  %v592_v2 = vld [vmem:[%s850_s1 + $0x10] ss:$0 sps:$4 sm:$0x33] (!%p142_p9)  }
   0xe   : > { %145 = sbr.rel (%p142_p9) target bundleno = 267 (0x10b), region = 32  ;;  %519 = vmatprep.subr.bf16.mxu0 (!%p142_p9), %v590_v0  ;;  %541 = vmatprep.subr.bf16.mxu1 (!%p142_p9), %v590_v0  ;;  %p166_p10 = scmp.lt.s32.totalorder (!%p142_p9), %s480_s28, 31  ;;  %vm281_vm0 = vcmask (!%p142_p9), 1041408   ;;  %vm256_vm1 = vcmask (!%p142_p9), 293888   ;;  %v482_v12 = vld [vmem:[%s851_s2] ss:$0 sm:$0xff] (!%p142_p9) }
   0xf   : > { %520 = vmatpush3.bf16.msra.mxu0 (!%p142_p9), %v590_v0  ;;  %544 = vmatpush3.bf16.msra.mxu1 (!%p142_p9), %v590_v0  ;;  %v283_v3 = vsel (!%p142_p9), %vm281_vm0, %v592_v2, 0  ;;  %s162_s8 = sand.u32 (!%p142_p9), 1, %s655_s13   ;;  %vm382_vm2 = vcmask (!%p142_p9), 261120   ;;  %s507_s19 = sshll.u32 (!%p142_p9), %s709_s16, 11 }
  0x10   : > { %521 = vmatprep.subr.bf16.mxu0 (!%p142_p9), %v591_v1  ;;  %542 = vmatprep.subr.bf16.mxu1 (!%p142_p9), %v591_v1  ;;  %s479_s9 = sshll.u32 (!%p142_p9), %s162_s8, 7  ;;  %s790_s25 = scalar_lea.hbm (!%p142_p9), %s852_s3, %s507_s19 }
  0x11   : > { %s763_s17 = scalar_lea.vmem (!%p142_p9), [#allocation2], %s479_s9  ;;  %s808_s26 = scalar_lea.sflag (!%p142_p9), [#allocation3], %s162_s8 }
  0x12   : > { %s413_s20 = sshll.u32 (!%p142_p9), %s763_s17, 4  ;;  %s792_s20 = int_to_ptr.vmem [resolvable:$true] %s413_s20 }
  0x13   : > { %522 = vmatpush3.bf16.msra.mxu0 (!%p142_p9), %v591_v1  ;;  %545 = vmatpush3.bf16.msra.mxu1 (!%p142_p9), %v591_v1  ;;  %s601_s27 = scalar_lea.vmem (!%p142_p9), %s792_s20, 2048 }
  0x14   : > { %547 = vmatprep.subr.msk.bf16.mxu0 (!%p142_p9), %vm281_vm0, %v592_v2  ;;  %548 = vmatprep.subr.msk.bf16.mxu1 (!%p142_p9), %vm281_vm0, %v592_v2  ;;  %p602_p11 = scmp.ne.s32.totalorder (!%p142_p9), %s792_s20, %s601_s27 }
  0x15   : > { %s860_s28 = smov (!%p166_p10, %s480_s28), 31 }
  0x16   : > { %s481_s4 = sshll.u32 %s860_s28, 2  ;;  %p603_p12 = pnand %p602_p11, %p726_p5 }
  0x17   : > { %s169_s7 = scalar_lea.vmem %s849_s0, %s481_s4  ;;  %524 = vmatpush3.bf16.msra.mxu0 %v283_v3  ;;  %546 = vmatpush3.bf16.msra.mxu1 %v283_v3  ;;  %s665_s28 = smov [#allocation2]  }
  0x18   : > { %v593_v4 = vld [vmem:[%s169_s7] sm:$0xff]   ;;  %v595_v6 = vld [vmem:[%s169_s7 + $0x8] sm:$0xff]   ;;  %v597_v8 = vld [vmem:[%s169_s7 + $0x10] sm:$0xff]   ;;  %p604_p13 = pneg %p603_p12  ;;  %s605_s29 = sshll.u32 %s665_s28, 4  ;;  %s606_s29 = int_to_ptr.vmem [resolvable:$false] %s605_s29 }
  0x19   : > { %v594_v5 = vld [vmem:[%s169_s7 + $0x20] sm:$0xff]   ;;  %525 = vmatprep.mubr.msk.bf16.mxu0 %vm256_vm1, %v593_v4  ;;  %v596_v7 = vld [vmem:[%s169_s7 + $0x28] sm:$0xff]   ;;  %v598_v9 = vld [vmem:[%s169_s7 + $0x30] sm:$0xff]   ;;  %s607_s30 = scalar_lea.vmem %s606_s29, 4096  ;;  %p608_p0 = scmp.lt.s32.totalorder %s792_s20, %s606_s29 }
  0x1a   : > { %533 = vmatprep.mubr.msk.bf16.mxu1 %vm256_vm1, %v594_v5  ;;  %526 = vmatmul.mubr.msk.bf16.vlgmr.msra.gmra.mrb[0].mxu0 %vm256_vm1, %v595_v6  ;;  %v599_v10 = vld [vmem:[%s169_s7 + $0x18] sm:$0xff]   ;;  %p609_p1 = scmp.lt.s32.totalorder %s607_s30, %s601_s27 }
  0x1b   : > { %534 = vmatmul.mubr.msk.bf16.vlgmr.msra.gmra.mrb[0].mxu1 %vm256_vm1, %v596_v7  ;;  %529 = vmatprep.mubr.msk.bf16.mxu0 %vm256_vm1, %v597_v8  ;;  %v600_v11 = vld [vmem:[%s169_s7 + $0x38] sm:$0xff]  }
  0x1c   : > { %537 = vmatprep.mubr.msk.bf16.mxu1 %vm256_vm1, %v598_v9  ;;  %p610_p2 = por %p609_p1, %p608_p0 }
  0x1e   : > { %p611_p3 = pnand %p610_p2, %p604_p13 }
  0x22   : > { %530 = vmatmul.mubr.msk.bf16.gmra.mrb[4].mxu0 %vm256_vm1, %v599_v10 }
  0x23   : > { %538 = vmatmul.mubr.msk.bf16.gmra.mrb[4].mxu1 %vm256_vm1, %v600_v11 }
  0xed   : > { %v527_v13 = vpop.f32.mrb[0].mxu0 }
  0xee   : > { %v535_v14 = vpop.f32.mrb[0].mxu1  ;;  %v328_v15 = vadd.f32 %v527_v13, %v482_v12  ;;  %v319_v17 = vpop.f32.mrb[1].mxu0 }
  0xef   : > { %v360_v16 = vadd.f32 %v535_v14, %v482_v12  ;;  %v351_v18 = vpop.f32.mrb[1].mxu1  ;;  %v320_v19 = vadd.f32 %v482_v12, %v319_v17  ;;  %v528_v21 = vpop.f32.mrb[2].mxu0 }
  0xf0   : > { %v352_v20 = vadd.f32 %v482_v12, %v351_v18  ;;  %v536_v22 = vpop.f32.mrb[2].mxu1  ;;  %385 = vst.msk [vmem:[%s763_s17 + $0x10] sm:$0xff] %vm382_vm2, %v328_v15  ;;  %v331_v23 = vadd.f32 %v528_v21, %v482_v12  ;;  %v322_v25 = vpop.f32.mrb[3].mxu0 }
  0xf1   : > { %393 = vst.msk [vmem:[%s763_s17 + $0x50] sm:$0xff] %vm382_vm2, %v360_v16  ;;  %v363_v24 = vadd.f32 %v536_v22, %v482_v12  ;;  %v354_v26 = vpop.f32.mrb[3].mxu1  ;;  %383 = vst.msk [vmem:[%s763_s17] sm:$0xff] %vm382_vm2, %v320_v19  ;;  %v323_v27 = vadd.f32 %v482_v12, %v322_v25 }
  0xf2   : > { %391 = vst.msk [vmem:[%s763_s17 + $0x40] sm:$0xff] %vm382_vm2, %v352_v20  ;;  %v355_v28 = vadd.f32 %v482_v12, %v354_v26  ;;  %386 = vst.msk [vmem:[%s763_s17 + $0x18] sm:$0xff] %vm382_vm2, %v331_v23 }
  0xf3   : > { %394 = vst.msk [vmem:[%s763_s17 + $0x58] sm:$0xff] %vm382_vm2, %v363_v24  ;;  %384 = vst.msk [vmem:[%s763_s17 + $0x8] sm:$0xff] %vm382_vm2, %v323_v27 }
  0xf4   : > { %392 = vst.msk [vmem:[%s763_s17 + $0x48] sm:$0xff] %vm382_vm2, %v355_v28 }
  0xf5   : > { %v531_v29 = vpop.f32.mrb[4].mxu0 }
  0xf6   : > { %v539_v30 = vpop.f32.mrb[4].mxu1  ;;  %v344_v31 = vadd.f32 %v531_v29, %v482_v12  ;;  %v335_v33 = vpop.f32.mrb[5].mxu0 }
  0xf7   : > { %v376_v32 = vadd.f32 %v539_v30, %v482_v12  ;;  %v367_v34 = vpop.f32.mrb[5].mxu1  ;;  %v336_v35 = vadd.f32 %v482_v12, %v335_v33  ;;  %v532_v37 = vpop.f32.mrb[6].mxu0 }
  0xf8   : > { %v368_v36 = vadd.f32 %v482_v12, %v367_v34  ;;  %v540_v38 = vpop.f32.mrb[6].mxu1  ;;  %389 = vst.msk [vmem:[%s763_s17 + $0x30] sm:$0xff] %vm382_vm2, %v344_v31  ;;  %v347_v39 = vadd.f32 %v532_v37, %v482_v12  ;;  %v338_v41 = vpop.f32.mrb[7].mxu0 }
  0xf9   : > { %397 = vst.msk [vmem:[%s763_s17 + $0x70] sm:$0xff] %vm382_vm2, %v376_v32  ;;  %v379_v40 = vadd.f32 %v540_v38, %v482_v12  ;;  %v370_v42 = vpop.f32.mrb[7].mxu1  ;;  %387 = vst.msk [vmem:[%s763_s17 + $0x20] sm:$0xff] %vm382_vm2, %v336_v35  ;;  %v339_v43 = vadd.f32 %v482_v12, %v338_v41 }
  0xfa   : > { %395 = vst.msk [vmem:[%s763_s17 + $0x60] sm:$0xff] %vm382_vm2, %v368_v36  ;;  %v371_v44 = vadd.f32 %v482_v12, %v370_v42  ;;  %390 = vst.msk [vmem:[%s763_s17 + $0x38] sm:$0xff] %vm382_vm2, %v347_v39 }
  0xfb   : > { %398 = vst.msk [vmem:[%s763_s17 + $0x78] sm:$0xff] %vm382_vm2, %v379_v40  ;;  %388 = vst.msk [vmem:[%s763_s17 + $0x28] sm:$0xff] %vm382_vm2, %v339_v43 }
  0xfc   : > { %396 = vst.msk [vmem:[%s763_s17 + $0x68] sm:$0xff] %vm382_vm2, %v371_v44 }
  0xfd   : > { %614 = shalt.err (!%p611_p3)
}
  0xfe   : > { %s615_s4 = scalar_lea.hbm %s790_s25, 2048  ;;  %s619_s7 = scalar_lea.hbm %s852_s3, 4096 }
  0xff   : > { %p616_p4 = scmp.ne.s32.totalorder %s790_s25, %s615_s4  ;;  %p620_p9 = scmp.lt.u32.totalorder %s790_s25, %s852_s3 }
 0x100   : > { %p621_p10 = scmp.lt.u32.totalorder %s619_s7, %s615_s4  ;;  %p623_p12 = scmp.lt.u32.totalorder %s615_s4, %s790_s25 }
 0x101   : > { %p617_p7 = pnand %p616_p4, %p726_p5 }
 0x102   : > { %p622_p11 = por %p621_p10, %p620_p9 }
 0x103   : > { %p618_p8 = pneg %p617_p7 }
 0x104   : > { %p624_p13 = por %p623_p12, %p622_p11 }
 0x106   : > { %p625_p0 = pnand %p624_p13, %p618_p8 }
 0x108   : > { %628 = shalt.err (!%p625_p0)
}
 0x109   : > { %s666_s10 = smov 128   ;;  %s667_s11 = smov 8  }
 0x10a   : > { %549 = dma.vmem_to_hbm [thread:$0]  (%p726_p5), %s792_s20, 2048, %s790_s25, %s808_s26, %s666_s10, %s666_s10, %s667_s11  }
 0x10b PF: > { %p555_p1 = scmp.ge.s32.totalorder %s663_s15, 2  ;;  %s428_s17 = sand.u32 1, %s651_s12  }
 0x10c   : > { %s429_s19 = scalar_lea.sflag [#allocation3], %s428_s17 }
 0x10d   : > { %p552_p2 = pnand %p555_p1, %p730_p6 }
 0x10f   : > { %646 = dma.done.wait (!%p552_p2), %s429_s19, 2048  }
 0x110   : > { %648 = vsyncadd (!%p552_p2), %s429_s19, 4294965248  ;;  %p13_p3 = scmp.ge.s32.totalorder %s713_s18, 4   ;;  %s855_s12 = smov %s655_s13 }
 0x111   : > { %s856_s13 = smov %s659_s14  ;;  %s857_s14 = smov %s724_s21 }
 0x112   : > { %s858_s15 = smov %s713_s18  ;;  %15 = sbr.rel (!%p13_p3) target bundleno = 3 (0x3), region = 67 }
 0x119   :  { %434 = vsyncpa [#allocation3], 1 }
 0x11a   :  { %436 = vsyncpa [#allocation3 + $0x1], 1 }

</bundles_post_ra>
